<compile_context>
chip_gen: v7x
topology: tpu7x:2x2x1
jax: 0.10.0
libtpu: 0.0.40
codegen_flags: <defaults>
</compile_context>

<pallas_src>
import functools

import jax
import jax.numpy as jnp
from jax.experimental import pallas as pl
from jax.experimental.pallas import tpu as pltpu


def ca_kernel(x_ref, w1_ref, b1_ref, w2t_ref, b2_ref, o_ref, *, inv_hw):
    # x_ref: (NB, C, HWb)   w1_ref: (4, C)   b1_ref: (1, 4)
    # w2t_ref: (4, C)       b2_ref: (1, C)   o_ref: (NB, C, HWb)
    nb, c, hw_blk = x_ref.shape

    # ---- Global average pool (f32 accumulation) -------------------------
    if hw_blk % 128 == 0 and hw_blk > 128 and (hw_blk // 128) <= 256:
        # Accumulate 128-lane chunks on the VPU; one cross-lane reduce at end.
        acc = x_ref[:, :, 0:128].astype(jnp.float32)
        for s in range(1, hw_blk // 128):
            acc = acc + x_ref[:, :, s * 128:(s + 1) * 128].astype(jnp.float32)
        pooled = jnp.sum(acc, axis=-1) * inv_hw                      # (NB, C)
    else:
        pooled = jnp.sum(x_ref[...], axis=-1, dtype=jnp.float32) * inv_hw

    # ---- Squeeze-excite path on the VPU (tiny; keep off the MXU) ---------
    # y1_j = relu(<pooled, w1[j]> + b1[j]) ;  y2 = b2 + sum_j y1_j * w2t[j]
    y2 = b2_ref[...].astype(jnp.float32)                             # (1, C)
    for j in range(4):
        w1j = w1_ref[j:j + 1, :].astype(jnp.float32)                 # (1, C)
        y1j = jnp.sum(pooled * w1j, axis=-1, keepdims=True)          # (NB, 1)
        y1j = jnp.maximum(y1j + b1_ref[:, j:j + 1].astype(jnp.float32), 0.0)
        y2 = y2 + y1j * w2t_ref[j:j + 1, :].astype(jnp.float32)      # (NB, C)
    scale = jax.nn.sigmoid(y2)                                       # (NB, C)

    # ---- Broadcast multiply, streaming the tile straight from VMEM -------
    x_tile = x_ref[...]
    o_ref[...] = (x_tile * scale.astype(x_tile.dtype)[:, :, None]).astype(o_ref.dtype)


def _tpu_params():
    """Return (target_tile_bytes, vmem_limit_cap_bytes, min_grid_steps)."""
    vmem_cap = 128 << 20
    try:
        info = pltpu.get_tpu_info()
        cap = int(getattr(info, "vmem_capacity_bytes", vmem_cap))
        if cap > 0:
            vmem_cap = cap
    except Exception:
        pass
    kind = ""
    try:
        kind = (jax.devices()[0].device_kind or "").lower()
    except Exception:
        pass
    # Dual-TensorCore chips: want >= 2 grid steps per core so each can pipeline.
    dual_core = any(t in kind for t in ("v7", "7x", "v4", "v5p"))
    min_steps = 4 if dual_core else 1
    # Smaller VMEM (v7x, 64 MiB) -> 8 MiB tiles; 128 MiB chips -> 16 MiB tiles.
    target_tile = (8 << 20) if vmem_cap <= (64 << 20) else (16 << 20)
    # Never request all of physical VMEM; leave room for compiler scratch.
    vmem_limit_cap = max(32 << 20, vmem_cap - (12 << 20))
    return target_tile, vmem_limit_cap, min_steps


def _pick_block_batch(n, per_image_bytes, target_bytes, min_steps, vmem_nb_cap):
    """Largest NB dividing N that fits the tile-size target and VMEM cap,
    splitting only as far as the chip's TensorCore count warrants."""
    cap = max(1, min(target_bytes // max(per_image_bytes, 1), vmem_nb_cap))
    if min_steps > 1 and n >= 2:
        steps = min(min_steps, n)
        cap = min(cap, max(1, n // steps))
    cap = int(max(1, min(cap, n)))
    for nb in range(cap, 0, -1):
        if n % nb == 0:
            return nb
    return 1


def ca_layer_3(x, w1, b1, w2, b2):
    """x: (N, C, H, W).  w1: (4, C), b1: (4,), w2: (C, 4), b2: (C,)."""
    N, C, H, W = x.shape
    HW = H * W
    itemsize = jnp.dtype(x.dtype).itemsize

    target_tile, vmem_limit_cap, min_steps = _tpu_params()

    # Lane-dense stores: pad HW to a multiple of 128 when the bloat is modest.
    # Zeros are benign (pool divides by the true HW); padding sliced off after.
    HW_pad = ((HW + 127) // 128) * 128
    pad = HW_pad - HW
    use_pad = pad > 0 and HW_pad * 2 <= HW * 3
    x_flat = x.reshape(N, C, HW)
    if use_pad:
        x_flat = jnp.pad(x_flat, ((0, 0), (0, 0), (0, pad)))
        HW_blk = HW_pad
    else:
        HW_blk = HW

    w1 = jnp.asarray(w1)                     # (4, C)
    w2t = jnp.asarray(w2).T                  # (4, C)
    b1_2d = jnp.asarray(b1).reshape(1, 4)
    b2_2d = jnp.asarray(b2).reshape(1, C)
    weight_bytes = sum(int(a.size) * jnp.dtype(a.dtype).itemsize
                       for a in (w1, w2t, b1_2d, b2_2d))

    per_image_bytes = C * HW_blk * itemsize
    headroom = (2 << 20) + 2 * weight_bytes
    # Largest NB such that double-buffered in+out tiles (4x tile) fit the cap.
    vmem_nb_cap = max(1, (vmem_limit_cap - headroom) // (4 * per_image_bytes))
    NB = _pick_block_batch(N, per_image_bytes, target_tile, min_steps, vmem_nb_cap)
    tile_bytes = NB * per_image_bytes

    pipeline_mode = None
    resident = 4 * tile_bytes + headroom
    if resident > vmem_limit_cap:
        # Even NB=1 cannot be double-buffered: single-buffer the big operands.
        # TODO(synk): for per-image tiles beyond ~half of VMEM, a two-pass
        # (pool kernel, then scale kernel) spatial split would be required.
        pipeline_mode = pl.Buffered(1)
        resident = 2 * tile_bytes + headroom

    vmem_limit = int(min(max(resident + (4 << 20), 32 << 20), vmem_limit_cap))

    grid = (N // NB,)

    if pipeline_mode is None:
        x_spec = pl.BlockSpec((NB, C, HW_blk), lambda n: (n, 0, 0))
        o_spec = pl.BlockSpec((NB, C, HW_blk), lambda n: (n, 0, 0))
    else:
        x_spec = pl.BlockSpec((NB, C, HW_blk), lambda n: (n, 0, 0),
                              pipeline_mode=pipeline_mode)
        o_spec = pl.BlockSpec((NB, C, HW_blk), lambda n: (n, 0, 0),
                              pipeline_mode=pipeline_mode)

    cost = pl.CostEstimate(
        flops=2 * N * C * HW_blk,
        transcendentals=N * (C + 4),
        bytes_accessed=2 * N * C * HW_blk * itemsize + weight_bytes,
    )

    out = pl.pallas_call(
        functools.partial(ca_kernel, inv_hw=1.0 / HW),
        out_shape=jax.ShapeDtypeStruct((N, C, HW_blk), x.dtype),
        grid_spec=pltpu.PrefetchScalarGridSpec(
            num_scalar_prefetch=0,
            grid=grid,
            in_specs=[
                x_spec,
                pl.BlockSpec((4, C), lambda n: (0, 0)),
                pl.BlockSpec((1, 4), lambda n: (0, 0)),
                pl.BlockSpec((4, C), lambda n: (0, 0)),
                pl.BlockSpec((1, C), lambda n: (0, 0)),
            ],
            out_specs=o_spec,
        ),
        compiler_params=pltpu.CompilerParams(
            dimension_semantics=("parallel",),
            vmem_limit_bytes=vmem_limit,
        ),
        cost_estimate=cost,
    )(x_flat, w1, b1_2d, w2t, b2_2d)

    if use_pad:
        out = out[:, :, :HW]
    return out.reshape(N, C, H, W)


def ca_layer_3_ref(x, w1, b1, w2, b2):
    """Pure-JAX reference mirroring the PyTorch module."""
    pooled = jnp.mean(x, axis=(2, 3))                        # (N, C)
    y1 = jnp.maximum(pooled @ w1.T + b1, 0.0)                # (N, 4)
    y2 = jax.nn.sigmoid(y1 @ w2.T + b2)                      # (N, C)
    return x * y2[:, :, None, None]


def _run_case(key, N, C, H, W):
    k_x, k_w1, k_b1, k_w2, k_b2 = jax.random.split(key, 5)
    x = jax.random.normal(k_x, (N, C, H, W), dtype=jnp.float32)
    # Conv2d(C, 4, 1).weight -> (4, C);  Conv2d(4, C, 1).weight -> (C, 4)
    w1 = jax.random.normal(k_w1, (4, C), dtype=jnp.float32) * 0.1
    b1 = jax.random.normal(k_b1, (4,), dtype=jnp.float32) * 0.1
    w2 = jax.random.normal(k_w2, (C, 4), dtype=jnp.float32) * 0.1
    b2 = jax.random.normal(k_b2, (C,), dtype=jnp.float32) * 0.1

    out = jax.block_until_ready(ca_layer_3(x, w1, b1, w2, b2))
    ref = ca_layer_3_ref(x, w1, b1, w2, b2)
    assert out.shape == (N, C, H, W)
    assert jnp.allclose(out, ref, atol=1e-5, rtol=1e-5), \
        f"mismatch vs reference for shape {(N, C, H, W)}"


if __name__ == "__main__":
    key = jax.random.PRNGKey(0)
    k0, k1 = jax.random.split(key, 2)

    # Lane-dense case (HW = 256), batched tiles.
    _run_case(k0, N=8, C=16, H=16, W=16)
    # Non-multiple-of-128 spatial size (14x14 = 196) -> exercises the
    # lane-dense padding path.
    _run_case(k1, N=2, C=16, H=14, W=14)

    print("KERNEL_OK")
</pallas_src>

<mosaic_0001>
module attributes {stable_mosaic.version = 11 : i64} {
  func.func @ca_kernel(%arg0: i32, %arg1: memref<8x16x256xf32, #tpu.memory_space<vmem>>, %arg2: memref<4x16xf32, #tpu.memory_space<vmem>>, %arg3: memref<1x4xf32, #tpu.memory_space<vmem>>, %arg4: memref<4x16xf32, #tpu.memory_space<vmem>>, %arg5: memref<1x16xf32, #tpu.memory_space<vmem>>, %arg6: memref<8x16x256xf32, #tpu.memory_space<vmem>>) attributes {dimension_semantics = [#tpu.dimension_semantics<parallel>], iteration_bounds = array<i64: 1>, scalar_prefetch = 0 : i64, scratch_operands = 0 : i64, tpu.core_type = #tpu.core_type<tc>, window_params = [{transform_indices = @transform_0, window_bounds = array<i64: 8, 16, 256>}, {pipeline_mode = #tpu.pipeline_mode<synchronous>, transform_indices = @transform_1, window_bounds = array<i64: 4, 16>}, {pipeline_mode = #tpu.pipeline_mode<synchronous>, transform_indices = @transform_2, window_bounds = array<i64: 1, 4>}, {pipeline_mode = #tpu.pipeline_mode<synchronous>, transform_indices = @transform_3, window_bounds = array<i64: 4, 16>}, {pipeline_mode = #tpu.pipeline_mode<synchronous>, transform_indices = @transform_4, window_bounds = array<i64: 1, 16>}, {transform_indices = @transform_5, window_bounds = array<i64: 8, 16, 256>}]} {
    %c0 = arith.constant 0 : index
    %c0_0 = arith.constant 0 : index
    %c0_1 = arith.constant 0 : index
    %0 = vector.load %arg1[%c0, %c0_0, %c0_1] : memref<8x16x256xf32, #tpu.memory_space<vmem>>, vector<8x16x128xf32>
    %c0_2 = arith.constant 0 : index
    %c0_3 = arith.constant 0 : index
    %c128 = arith.constant 128 : index
    %1 = vector.load %arg1[%c0_2, %c0_3, %c128] : memref<8x16x256xf32, #tpu.memory_space<vmem>>, vector<8x16x128xf32>
    %2 = arith.addf %0, %1 : vector<8x16x128xf32>
    %cst = arith.constant dense<0.000000e+00> : vector<8x16xf32>
    %3 = vector.multi_reduction <add>, %2, %cst [2] : vector<8x16x128xf32> to vector<8x16xf32>
    %cst_4 = arith.constant 3.906250e-03 : f32
    %4 = vector.broadcast %cst_4 : f32 to vector<8x16xf32>
    %5 = arith.mulf %3, %4 : vector<8x16xf32>
    %c0_5 = arith.constant 0 : index
    %c0_6 = arith.constant 0 : index
    %6 = vector.load %arg5[%c0_5, %c0_6] : memref<1x16xf32, #tpu.memory_space<vmem>>, vector<1x16xf32>
    %c0_7 = arith.constant 0 : index
    %c0_8 = arith.constant 0 : index
    %7 = vector.load %arg2[%c0_7, %c0_8] : memref<4x16xf32, #tpu.memory_space<vmem>>, vector<1x16xf32>
    %8 = vector.broadcast %7 : vector<1x16xf32> to vector<8x16xf32>
    %9 = arith.mulf %5, %8 : vector<8x16xf32>
    %cst_9 = arith.constant dense<0.000000e+00> : vector<8xf32>
    %10 = vector.multi_reduction <add>, %9, %cst_9 [1] : vector<8x16xf32> to vector<8xf32>
    %11 = vector.shape_cast %10 : vector<8xf32> to vector<8x1xf32>
    %c0_10 = arith.constant 0 : index
    %c0_11 = arith.constant 0 : index
    %12 = vector.load %arg3[%c0_10, %c0_11] : memref<1x4xf32, #tpu.memory_space<vmem>>, vector<1x1xf32>
    %13 = vector.broadcast %12 : vector<1x1xf32> to vector<8x1xf32>
    %14 = arith.addf %11, %13 : vector<8x1xf32>
    %cst_12 = arith.constant 0.000000e+00 : f32
    %15 = vector.broadcast %cst_12 : f32 to vector<8x1xf32>
    %16 = arith.maximumf %14, %15 : vector<8x1xf32>
    %c0_13 = arith.constant 0 : index
    %c0_14 = arith.constant 0 : index
    %17 = vector.load %arg4[%c0_13, %c0_14] : memref<4x16xf32, #tpu.memory_space<vmem>>, vector<1x16xf32>
    %18 = vector.broadcast %16 : vector<8x1xf32> to vector<8x16xf32>
    %19 = vector.broadcast %17 : vector<1x16xf32> to vector<8x16xf32>
    %20 = arith.mulf %18, %19 : vector<8x16xf32>
    %21 = vector.broadcast %6 : vector<1x16xf32> to vector<8x16xf32>
    %22 = arith.addf %21, %20 : vector<8x16xf32>
    %c1 = arith.constant 1 : index
    %c0_15 = arith.constant 0 : index
    %23 = vector.load %arg2[%c1, %c0_15] : memref<4x16xf32, #tpu.memory_space<vmem>>, vector<1x16xf32>
    %24 = vector.broadcast %23 : vector<1x16xf32> to vector<8x16xf32>
    %25 = arith.mulf %5, %24 : vector<8x16xf32>
    %cst_16 = arith.constant dense<0.000000e+00> : vector<8xf32>
    %26 = vector.multi_reduction <add>, %25, %cst_16 [1] : vector<8x16xf32> to vector<8xf32>
    %27 = vector.shape_cast %26 : vector<8xf32> to vector<8x1xf32>
    %c0_17 = arith.constant 0 : index
    %c1_18 = arith.constant 1 : index
    %28 = vector.load %arg3[%c0_17, %c1_18] : memref<1x4xf32, #tpu.memory_space<vmem>>, vector<1x1xf32>
    %29 = vector.broadcast %28 : vector<1x1xf32> to vector<8x1xf32>
    %30 = arith.addf %27, %29 : vector<8x1xf32>
    %cst_19 = arith.constant 0.000000e+00 : f32
    %31 = vector.broadcast %cst_19 : f32 to vector<8x1xf32>
    %32 = arith.maximumf %30, %31 : vector<8x1xf32>
    %c1_20 = arith.constant 1 : index
    %c0_21 = arith.constant 0 : index
    %33 = vector.load %arg4[%c1_20, %c0_21] : memref<4x16xf32, #tpu.memory_space<vmem>>, vector<1x16xf32>
    %34 = vector.broadcast %32 : vector<8x1xf32> to vector<8x16xf32>
    %35 = vector.broadcast %33 : vector<1x16xf32> to vector<8x16xf32>
    %36 = arith.mulf %34, %35 : vector<8x16xf32>
    %37 = arith.addf %22, %36 : vector<8x16xf32>
    %c2 = arith.constant 2 : index
    %c0_22 = arith.constant 0 : index
    %38 = vector.load %arg2[%c2, %c0_22] : memref<4x16xf32, #tpu.memory_space<vmem>>, vector<1x16xf32>
    %39 = vector.broadcast %38 : vector<1x16xf32> to vector<8x16xf32>
    %40 = arith.mulf %5, %39 : vector<8x16xf32>
    %cst_23 = arith.constant dense<0.000000e+00> : vector<8xf32>
    %41 = vector.multi_reduction <add>, %40, %cst_23 [1] : vector<8x16xf32> to vector<8xf32>
    %42 = vector.shape_cast %41 : vector<8xf32> to vector<8x1xf32>
    %c0_24 = arith.constant 0 : index
    %c2_25 = arith.constant 2 : index
    %43 = vector.load %arg3[%c0_24, %c2_25] : memref<1x4xf32, #tpu.memory_space<vmem>>, vector<1x1xf32>
    %44 = vector.broadcast %43 : vector<1x1xf32> to vector<8x1xf32>
    %45 = arith.addf %42, %44 : vector<8x1xf32>
    %cst_26 = arith.constant 0.000000e+00 : f32
    %46 = vector.broadcast %cst_26 : f32 to vector<8x1xf32>
    %47 = arith.maximumf %45, %46 : vector<8x1xf32>
    %c2_27 = arith.constant 2 : index
    %c0_28 = arith.constant 0 : index
    %48 = vector.load %arg4[%c2_27, %c0_28] : memref<4x16xf32, #tpu.memory_space<vmem>>, vector<1x16xf32>
    %49 = vector.broadcast %47 : vector<8x1xf32> to vector<8x16xf32>
    %50 = vector.broadcast %48 : vector<1x16xf32> to vector<8x16xf32>
    %51 = arith.mulf %49, %50 : vector<8x16xf32>
    %52 = arith.addf %37, %51 : vector<8x16xf32>
    %c3 = arith.constant 3 : index
    %c0_29 = arith.constant 0 : index
    %53 = vector.load %arg2[%c3, %c0_29] : memref<4x16xf32, #tpu.memory_space<vmem>>, vector<1x16xf32>
    %54 = vector.broadcast %53 : vector<1x16xf32> to vector<8x16xf32>
    %55 = arith.mulf %5, %54 : vector<8x16xf32>
    %cst_30 = arith.constant dense<0.000000e+00> : vector<8xf32>
    %56 = vector.multi_reduction <add>, %55, %cst_30 [1] : vector<8x16xf32> to vector<8xf32>
    %57 = vector.shape_cast %56 : vector<8xf32> to vector<8x1xf32>
    %c0_31 = arith.constant 0 : index
    %c3_32 = arith.constant 3 : index
    %58 = vector.load %arg3[%c0_31, %c3_32] : memref<1x4xf32, #tpu.memory_space<vmem>>, vector<1x1xf32>
    %59 = vector.broadcast %58 : vector<1x1xf32> to vector<8x1xf32>
    %60 = arith.addf %57, %59 : vector<8x1xf32>
    %cst_33 = arith.constant 0.000000e+00 : f32
    %61 = vector.broadcast %cst_33 : f32 to vector<8x1xf32>
    %62 = arith.maximumf %60, %61 : vector<8x1xf32>
    %c3_34 = arith.constant 3 : index
    %c0_35 = arith.constant 0 : index
    %63 = vector.load %arg4[%c3_34, %c0_35] : memref<4x16xf32, #tpu.memory_space<vmem>>, vector<1x16xf32>
    %64 = vector.broadcast %62 : vector<8x1xf32> to vector<8x16xf32>
    %65 = vector.broadcast %63 : vector<1x16xf32> to vector<8x16xf32>
    %66 = arith.mulf %64, %65 : vector<8x16xf32>
    %67 = arith.addf %52, %66 : vector<8x16xf32>
    %68 = arith.negf %67 : vector<8x16xf32>
    %69 = math.exp %68 : vector<8x16xf32>
    %cst_36 = arith.constant 1.000000e+00 : f32
    %70 = vector.broadcast %cst_36 : f32 to vector<8x16xf32>
    %71 = arith.addf %70, %69 : vector<8x16xf32>
    %72 = arith.divf %70, %71 : vector<8x16xf32>
    %c0_37 = arith.constant 0 : index
    %c0_38 = arith.constant 0 : index
    %c0_39 = arith.constant 0 : index
    %73 = vector.load %arg1[%c0_37, %c0_38, %c0_39] : memref<8x16x256xf32, #tpu.memory_space<vmem>>, vector<8x16x256xf32>
    %74 = vector.shape_cast %72 : vector<8x16xf32> to vector<8x16x1xf32>
    %75 = vector.broadcast %74 : vector<8x16x1xf32> to vector<8x16x256xf32>
    %76 = arith.mulf %73, %75 : vector<8x16x256xf32>
    %c0_40 = arith.constant 0 : index
    %c0_41 = arith.constant 0 : index
    %c0_42 = arith.constant 0 : index
    %77 = vector.load %arg6[%c0_40, %c0_41, %c0_42] : memref<8x16x256xf32, #tpu.memory_space<vmem>>, vector<8x16x256xf32>
    tpu.vector_store %arg6[%c0_40, %c0_41, %c0_42], %76 {strides = array<i32>} : memref<8x16x256xf32, #tpu.memory_space<vmem>>, vector<8x16x256xf32>,
    return
  }
  func.func @transform_0(%arg0: i32) -> (i32, i32, i32) {
    %c0_i32 = arith.constant 0 : i32
    %c0_i32_0 = arith.constant 0 : i32
    %c0_i32_1 = arith.constant 0 : i32
    return %arg0, %c0_i32, %c0_i32_0 : i32, i32, i32
  }
  func.func @transform_1(%arg0: i32) -> (i32, i32) {
    %c0_i32 = arith.constant 0 : i32
    %c0_i32_0 = arith.constant 0 : i32
    %c0_i32_1 = arith.constant 0 : i32
    return %c0_i32, %c0_i32_0 : i32, i32
  }
  func.func @transform_2(%arg0: i32) -> (i32, i32) {
    %c0_i32 = arith.constant 0 : i32
    %c0_i32_0 = arith.constant 0 : i32
    %c0_i32_1 = arith.constant 0 : i32
    return %c0_i32, %c0_i32_0 : i32, i32
  }
  func.func @transform_3(%arg0: i32) -> (i32, i32) {
    %c0_i32 = arith.constant 0 : i32
    %c0_i32_0 = arith.constant 0 : i32
    %c0_i32_1 = arith.constant 0 : i32
    return %c0_i32, %c0_i32_0 : i32, i32
  }
  func.func @transform_4(%arg0: i32) -> (i32, i32) {
    %c0_i32 = arith.constant 0 : i32
    %c0_i32_0 = arith.constant 0 : i32
    %c0_i32_1 = arith.constant 0 : i32
    return %c0_i32, %c0_i32_0 : i32, i32
  }
  func.func @transform_5(%arg0: i32) -> (i32, i32, i32) {
    %c0_i32 = arith.constant 0 : i32
    %c0_i32_0 = arith.constant 0 : i32
    %c0_i32_1 = arith.constant 0 : i32
    return %arg0, %c0_i32, %c0_i32_0 : i32, i32, i32
  }
}

</mosaic_0001>

<bundles_post_ra>
// kernel: tpu_custom_call.1
= control target key start
LH: loop header
LB: loop body
LE: loop exit
PB: predicated region body
PF: predicated region fallthrough
CT: control target
= control target key end

     0   :  { %10 = vsyncpa [#allocation3], 0  ;;  %s1696_s0 = inlined_call_operand.hbm [shape: f32[8,16,256], index: 0, kind: input, shape index: {}]   ;;  %s1697_s1 = inlined_call_operand.hbm [shape: f32[4,16], index: 1, kind: input, shape index: {}]   ;;  %s1698_s2 = inlined_call_operand.vmem [shape: f32[1,4], index: 2, kind: input, shape index: {}]   ;;  %s1699_s3 = inlined_call_operand.vmem [shape: f32[4,16], index: 3, kind: input, shape index: {}]   ;;  %s1700_s4 = inlined_call_operand.vmem [shape: f32[1,16], index: 4, kind: input, shape index: {}]   ;;  %s1701_s5 = inlined_call_operand.hbm [shape: f32[8,16,256], index: 5, kind: output, shape index: {}]  }
   0x1   :  { %11 = vsyncpa [#allocation6], 0 }
   0x2   :  { %12 = vsyncpa [#allocation4], 0  ;;  %s1248_s18 = smov [#allocation2]   ;;  %s1176_s22 = scalar_lea.hbm %s1696_s0, 4096 }
   0x3   :  { %s18_s19 = sshll.u32 %s1248_s18, 4  ;;  %p1177_p0 = scmp.ne.s32.totalorder %s1696_s0, %s1176_s22  ;;  %s19_s19 = int_to_ptr.vmem [resolvable:$true] %s18_s19 }
   0x4   :  { %p1180_p1 = scmp.lt.u32.totalorder %s1176_s22, %s1696_s0 }
   0x6   :  { %p1182_p2 = pnand %p1180_p1, %p1177_p0 }
   0x8   :  { %1185 = shalt.err (!%p1182_p2)
}
   0x9   :  { %s1186_s27 = scalar_lea.vmem %s19_s19, 4096  ;;  %p1191_p4 = scmp.lt.s32.totalorder %s19_s19, %s19_s19 }
   0xa   :  { %p1187_p3 = scmp.ne.s32.totalorder %s19_s19, %s1186_s27  ;;  %p1192_p5 = scmp.lt.s32.totalorder %s1186_s27, %s1186_s27 }
   0xc   :  { %p1193_p6 = por %p1192_p5, %p1191_p4 }
   0xe   :  { %p1194_p7 = pnand %p1193_p6, %p1187_p3 }
  0x10   :  { %1197 = shalt.err (!%p1194_p7)
}
  0x11   :  { %s1249_s28 = smov 256   ;;  %s1250_s29 = smov 16  }
  0x12   :  { %24 = dma.hbm_to_vmem [thread:$0]  %s1696_s0, 4096, %s19_s19, [#allocation3], %s1249_s28, %s1249_s28, %s1250_s29  }
  0x13   :  { %s1251_s7 = smov [#allocation5]   ;;  %s1198_s11 = scalar_lea.hbm %s1697_s1, 64 }
  0x14   :  { %s31_s8 = sshll.u32 %s1251_s7, 4  ;;  %p1199_p8 = scmp.ne.s32.totalorder %s1697_s1, %s1198_s11  ;;  %s32_s8 = int_to_ptr.vmem [resolvable:$true] %s31_s8 }
  0x15   :  { %p1202_p9 = scmp.lt.u32.totalorder %s1198_s11, %s1697_s1 }
  0x17   :  { %p1204_p10 = pnand %p1202_p9, %p1199_p8 }
  0x19   :  { %1207 = shalt.err (!%p1204_p10)
}
  0x1a   :  { %s1208_s16 = scalar_lea.vmem %s32_s8, 64  ;;  %p1213_p12 = scmp.lt.s32.totalorder %s32_s8, %s32_s8 }
  0x1b   :  { %p1209_p11 = scmp.ne.s32.totalorder %s32_s8, %s1208_s16  ;;  %p1214_p13 = scmp.lt.s32.totalorder %s1208_s16, %s1208_s16 }
  0x1d   :  { %p1215_p0 = por %p1214_p13, %p1213_p12 }
  0x1f   :  { %p1216_p1 = pnand %p1215_p0, %p1209_p11 }
  0x21   :  { %1219 = shalt.err (!%p1216_p1)
}
  0x22   :  { %34 = dma.hbm_to_vmem [thread:$0]  %s1697_s1, 64, %s32_s8, [#allocation6]  }
  0x23   :  { %1242 = dma.done.wait [#allocation3], 4096  }
  0x24   :  { %1243 = vsyncadd [#allocation3], 4294963200 }
  0x25   :  { %1244 = dma.done.wait [#allocation6], 64  }
  0x26   :  { %1245 = vsyncadd [#allocation6], 4294967232  ;;  %v49_v0 = vld [vmem:[#allocation2 + $0x20] sm:$0xff]  ;;  %v65_v1 = vld [vmem:[#allocation2 + $0x28] sm:$0xff]  ;;  %v1252_v49 = vmov 0   ;;  %vm250_vm0 = vcmask 130112  }
  0x27   :  { %v47_v2 = vld [vmem:[#allocation2] sm:$0xff]  ;;  %v81_v3 = vadd.f32 %v65_v1, %v49_v0  ;;  %v63_v4 = vld [vmem:[#allocation2 + $0x8] sm:$0xff]  ;;  %v50_v5 = vld [vmem:[#allocation2 + $0x30] sm:$0xff]  ;;  %1150 = vset.pattern.permute.xlu0 %v1252_v49  ;;  %1149 = vset.pattern.permute.xlu1 %v1252_v49  ;;  %vm315_vm1 = vcmask 1041409   ;;  %vm317_vm2 = vcmask 1042434   ;;  %vm319_vm3 = vcmask 1043459  }
  0x28   :  { %v66_v6 = vld [vmem:[#allocation2 + $0x38] sm:$0xff]  ;;  %v79_v7 = vadd.f32 %v63_v4, %v47_v2  ;;  %v48_v8 = vld [vmem:[#allocation2 + $0x10] sm:$0xff]  ;;  %v51_v14 = vld [vmem:[#allocation2 + $0x40] sm:$0xff]  ;;  %vm321_vm4 = vcmask 1044484   ;;  %vm323_vm5 = vcmask 1045509   ;;  %vm325_vm6 = vcmask 1046534  }
  0x29   :  { %v64_v9 = vld [vmem:[#allocation2 + $0x18] sm:$0xff]  ;;  %99 = vadd.xlane.f32.xlu1 %v81_v3  ;;  %v82_v10 = vadd.f32 %v66_v6, %v50_v5  ;;  %v52_v12 = vld [vmem:[#allocation2 + $0x50] sm:$0xff]  ;;  %v67_v15 = vld [vmem:[#allocation2 + $0x48] sm:$0xff]  ;;  %vm327_vm7 = vcmask 1047559   ;;  %vm330_vm8 = vcmask 130048  }
  0x2a   :  { %95 = vadd.xlane.f32.xlu0 %v79_v7  ;;  %v80_v11 = vadd.f32 %v64_v9, %v48_v8  ;;  %v68_v13 = vld [vmem:[#allocation2 + $0x58] sm:$0xff]  ;;  %v83_v17 = vadd.f32 %v67_v15, %v51_v14  ;;  %v54_v18 = vld [vmem:[#allocation2 + $0x70] sm:$0xff]  ;;  %v53_v20 = vld [vmem:[#allocation2 + $0x60] sm:$0xff] }
  0x2b   :  { %v84_v16 = vadd.f32 %v68_v13, %v52_v12  ;;  %v70_v19 = vld [vmem:[#allocation2 + $0x78] sm:$0xff]  ;;  %v69_v21 = vld [vmem:[#allocation2 + $0x68] sm:$0xff]  ;;  %v56_v24 = vld [vmem:[#allocation2 + $0x90] sm:$0xff] }
  0x2c   :  { %v86_v22 = vadd.f32 %v70_v19, %v54_v18  ;;  %v85_v23 = vadd.f32 %v69_v21, %v53_v20  ;;  %v72_v25 = vld [vmem:[#allocation2 + $0x98] sm:$0xff]  ;;  %v55_v26 = vld [vmem:[#allocation2 + $0x80] sm:$0xff]  ;;  %v71_v27 = vld [vmem:[#allocation2 + $0x88] sm:$0xff] }
  0x2d   :  { %101 = vadd.xlane.f32.xlu1 %v82_v10  ;;  %v88_v28 = vadd.f32 %v72_v25, %v56_v24  ;;  %v87_v29 = vadd.f32 %v71_v27, %v55_v26  ;;  %v58_v30 = vld [vmem:[#allocation2 + $0xb0] sm:$0xff]  ;;  %v74_v31 = vld [vmem:[#allocation2 + $0xb8] sm:$0xff]  ;;  %v57_v32 = vld [vmem:[#allocation2 + $0xa0] sm:$0xff] }
  0x2e   :  { %97 = vadd.xlane.f32.xlu0 %v80_v11  ;;  %v73_v33 = vld [vmem:[#allocation2 + $0xa8] sm:$0xff]  ;;  %v90_v34 = vadd.f32 %v74_v31, %v58_v30  ;;  %v60_v36 = vld [vmem:[#allocation2 + $0xd0] sm:$0xff]  ;;  %v76_v37 = vld [vmem:[#allocation2 + $0xd8] sm:$0xff] }
  0x2f   :  { %v89_v35 = vadd.f32 %v73_v33, %v57_v32  ;;  %v59_v38 = vld [vmem:[#allocation2 + $0xc0] sm:$0xff]  ;;  %v75_v39 = vld [vmem:[#allocation2 + $0xc8] sm:$0xff]  ;;  %v92_v40 = vadd.f32 %v76_v37, %v60_v36  ;;  %v62_v42 = vld [vmem:[#allocation2 + $0xf0] sm:$0xff] }
  0x30   :  { %v91_v41 = vadd.f32 %v75_v39, %v59_v38  ;;  %v78_v43 = vld [vmem:[#allocation2 + $0xf8] sm:$0xff]  ;;  %v61_v44 = vld [vmem:[#allocation2 + $0xe0] sm:$0xff]  ;;  %v77_v45 = vld [vmem:[#allocation2 + $0xe8] sm:$0xff] }
  0x31   :  { %105 = vadd.xlane.f32.xlu1 %v84_v16  ;;  %v94_v46 = vadd.f32 %v78_v43, %v62_v42  ;;  %v93_v47 = vadd.f32 %v77_v45, %v61_v44  ;;  %v1129_v48 = vld [vmem:[#allocation5] ss:$0 sm:$0xff]  ;;  %v1133_v50 = vld [vmem:[#allocation5 + $0x1] ss:$0 sm:$0xff]  ;;  %v1135_v51 = vld [vmem:[#allocation5 + $0x2] ss:$0 sm:$0xff] }
  0x32   :  { %103 = vadd.xlane.f32.xlu0 %v83_v17  ;;  %v1137_v52 = vld [vmem:[#allocation5 + $0x3] ss:$0 sm:$0xff] }
  0x35   :  { %109 = vadd.xlane.f32.xlu1 %v86_v22 }
  0x36   :  { %107 = vadd.xlane.f32.xlu0 %v85_v23 }
  0x39   :  { %113 = vadd.xlane.f32.xlu1 %v88_v28 }
  0x3a   :  { %111 = vadd.xlane.f32.xlu0 %v87_v29 }
  0x3d   :  { %117 = vadd.xlane.f32.xlu1 %v90_v34 }
  0x3e   :  { %115 = vadd.xlane.f32.xlu0 %v89_v35 }
  0x41   :  { %121 = vadd.xlane.f32.xlu1 %v92_v40 }
  0x42   :  { %119 = vadd.xlane.f32.xlu0 %v91_v41 }
  0x45   :  { %125 = vadd.xlane.f32.xlu1 %v94_v46 }
  0x46   :  { %123 = vadd.xlane.f32.xlu0 %v93_v47 }
  0x56   :  { %155 = vbcast.lane.b32.xlu1 %v1129_v48, 264 }
  0x5c   :  { %151 = vbcast.lane.b32.xlu0 %v1129_v48, 256 }
  0x60   :  { %368 = vbcast.lane.b32.xlu0 %v1133_v50, 256 }
  0x64   :  { %372 = vbcast.lane.b32.xlu0 %v1133_v50, 264 }
  0x68   :  { %560 = vbcast.lane.b32.xlu0 %v1135_v51, 256 }
  0x6c   :  { %564 = vbcast.lane.b32.xlu0 %v1135_v51, 264 }
  0x70   :  { %752 = vbcast.lane.b32.xlu0 %v1137_v52, 256 }
  0x74   :  { %756 = vbcast.lane.b32.xlu0 %v1137_v52, 264 }
  0xb6   :  { %v100_v53 = vpop.xlane.xlu1 %99 }
  0xb7   :  { %v96_v54 = vpop.xlane.xlu0 %95  ;;  %v1314_v5 = vmul.f32 0.00390625, %v100_v53 }
  0xb8   :  { %v1316_v6 = vmul.f32 0.00390625, %v96_v54 }
  0xba   :  { %v102_v55 = vpop.xlane.xlu1 %101 }
  0xbb   :  { %v98_v56 = vpop.xlane.xlu0 %97  ;;  %v1328_v16 = vmul.f32 0.00390625, %v102_v55 }
  0xbc   :  { %v1320_v11 = vmul.f32 0.00390625, %v98_v56 }
  0xbe   :  { %v106_v57 = vpop.xlane.xlu1 %105 }
  0xbf   :  { %v104_v58 = vpop.xlane.xlu0 %103  ;;  %v1322_v12 = vmul.f32 0.00390625, %v106_v57 }
  0xc0   :  { %v1342_v23 = vmul.f32 0.00390625, %v104_v58 }
  0xc2   :  { %v110_v59 = vpop.xlane.xlu1 %109 }
  0xc3   :  { %v108_v60 = vpop.xlane.xlu0 %107  ;;  %v1330_v17 = vmul.f32 0.00390625, %v110_v59 }
  0xc4   :  { %v1356_v30 = vmul.f32 0.00390625, %v108_v60 }
  0xc6   :  { %v114_v61 = vpop.xlane.xlu1 %113 }
  0xc7   :  { %v112_v62 = vpop.xlane.xlu0 %111  ;;  %v1344_v24 = vmul.f32 0.00390625, %v114_v61 }
  0xc8   :  { %v1374_v38 = vmul.f32 0.00390625, %v112_v62 }
  0xca   :  { %v118_v63 = vpop.xlane.xlu1 %117 }
  0xcb   :  { %v116_v0 = vpop.xlane.xlu0 %115  ;;  %v1358_v31 = vmul.f32 0.00390625, %v118_v63 }
  0xcc   :  { %v1378_v41 = vmul.f32 0.00390625, %v116_v0 }
  0xce   :  { %v122_v1 = vpop.xlane.xlu1 %121 }
  0xcf   :  { %v120_v2 = vpop.xlane.xlu0 %119  ;;  %v1360_v32 = vmul.f32 0.00390625, %v122_v1 }
  0xd0   :  { %v1382_v44 = vmul.f32 0.00390625, %v120_v2 }
  0xd2   :  { %v126_v3 = vpop.xlane.xlu1 %125 }
  0xd3   :  { %v124_v4 = vpop.xlane.xlu0 %123  ;;  %v1332_v18 = vmul.f32 0.00390625, %v126_v3 }
  0xd4   :  { %v1346_v25 = vmul.f32 0.00390625, %v124_v4 }
  0xd6   :  { %v156_v10 = vpop.permute.xlu1 %155 }
  0xd7   :  { %v152_v7 = vpop.permute.xlu0 %151  ;;  %v164_v14 = vmul.f32 %v156_v10, %v1322_v12  ;;  %v160_v15 = vmul.f32 %v156_v10, %v1320_v11  ;;  %v166_v20 = vmul.f32 %v156_v10, %v1330_v17  ;;  %v162_v21 = vmul.f32 %v156_v10, %v1328_v16 }
  0xd8   :  { %v161_v8 = vmul.f32 %v152_v7, %v1314_v5  ;;  %v159_v9 = vmul.f32 %v152_v7, %v1316_v6  ;;  %v168_v27 = vmul.f32 %v156_v10, %v1344_v24  ;;  %v163_v28 = vmul.f32 %v152_v7, %v1342_v23 }
  0xd9   :  { %v170_v34 = vmul.f32 %v156_v10, %v1358_v31  ;;  %v165_v35 = vmul.f32 %v152_v7, %v1356_v30  ;;  %v172_v39 = vmul.f32 %v156_v10, %v1360_v32  ;;  %v167_v40 = vmul.f32 %v152_v7, %v1374_v38 }
  0xda   :  { %198 = vperm.xlu0 %1150, %v161_v8   ;;  %192 = vperm.xlu1 %1149, %v159_v9   ;;  %v174_v42 = vmul.f32 %v156_v10, %v1332_v18  ;;  %v169_v43 = vmul.f32 %v152_v7, %v1378_v41  ;;  %v171_v45 = vmul.f32 %v152_v7, %v1382_v44 }
  0xdb   :  { %v1324_v13 = vpop.permute.xlu0 %368  ;;  %v173_v47 = vmul.f32 %v152_v7, %v1346_v25 }
  0xdc   :  { %v376_v46 = vmul.f32 %v1324_v13, %v1316_v6  ;;  %v378_v49 = vmul.f32 %v1324_v13, %v1314_v5  ;;  %v384_v51 = vmul.f32 %v1324_v13, %v1374_v38  ;;  %v380_v52 = vmul.f32 %v1324_v13, %v1342_v23 }
  0xdd   :  { %v382_v55 = vmul.f32 %v1324_v13, %v1356_v30  ;;  %v386_v60 = vmul.f32 %v1324_v13, %v1378_v41  ;;  %v388_v7 = vmul.f32 %v1324_v13, %v1382_v44 }
  0xde   :  { %207 = vperm.xlu0 %1150, %v164_v14   ;;  %195 = vperm.xlu1 %1149, %v160_v15   ;;  %v390_v14 = vmul.f32 %v1324_v13, %v1346_v25 }
  0xdf   :  { %v1334_v19 = vpop.permute.xlu0 %372 }
  0xe0   :  { %v1340_v22 = vmul.f32 %v1334_v19, %v1332_v18  ;;  %v377_v48 = vmul.f32 %v1334_v19, %v1320_v11  ;;  %v379_v50 = vmul.f32 %v1334_v19, %v1328_v16  ;;  %v381_v53 = vmul.f32 %v1334_v19, %v1322_v12 }
  0xe1   :  { %v383_v57 = vmul.f32 %v1334_v19, %v1330_v17  ;;  %v385_v0 = vmul.f32 %v1334_v19, %v1344_v24  ;;  %v387_v4 = vmul.f32 %v1334_v19, %v1358_v31 }
  0xe2   :  { %213 = vperm.xlu0 %1150, %v166_v20   ;;  %201 = vperm.xlu1 %1149, %v162_v21   ;;  %v389_v21 = vmul.f32 %v1334_v19, %v1360_v32 }
  0xe3   :  { %v1348_v26 = vpop.permute.xlu0 %560 }
  0xe4   :  { %v1354_v29 = vmul.f32 %v1348_v26, %v1346_v25  ;;  %v572_v58 = vmul.f32 %v1348_v26, %v1342_v23  ;;  %v568_v59 = vmul.f32 %v1348_v26, %v1316_v6  ;;  %v570_v61 = vmul.f32 %v1348_v26, %v1314_v5 }
  0xe5   :  { %v574_v62 = vmul.f32 %v1348_v26, %v1356_v30  ;;  %v576_v8 = vmul.f32 %v1348_v26, %v1374_v38  ;;  %v578_v20 = vmul.f32 %v1348_v26, %v1378_v41  ;;  %v580_v13 = vmul.f32 %v1348_v26, %v1382_v44 }
  0xe6   :  { %219 = vperm.xlu0 %1150, %v168_v27   ;;  %204 = vperm.xlu1 %1149, %v163_v28  }
  0xe7   :  { %v1362_v33 = vpop.permute.xlu0 %564 }
  0xe8   :  { %v1368_v36 = vmul.f32 %v1362_v33, %v1360_v32  ;;  %v1372_v37 = vmul.f32 %v1362_v33, %v1332_v18  ;;  %v569_v54 = vmul.f32 %v1362_v33, %v1320_v11  ;;  %v571_v56 = vmul.f32 %v1362_v33, %v1328_v16 }
  0xe9   :  { %v573_v2 = vmul.f32 %v1362_v33, %v1322_v12  ;;  %v579_v19 = vmul.f32 %v1362_v33, %v1358_v31 }
  0xea   :  { %225 = vperm.xlu0 %1150, %v170_v34   ;;  %210 = vperm.xlu1 %1149, %v165_v35  }
  0xeb   :  { %v753_v63 = vpop.permute.xlu0 %752 }
  0xec   :  { %v760_v1 = vmul.f32 %v753_v63, %v1316_v6  ;;  %v762_v3 = vmul.f32 %v753_v63, %v1314_v5  ;;  %v575_v6 = vmul.f32 %v1362_v33, %v1330_v17  ;;  %v764_v5 = vmul.f32 %v753_v63, %v1342_v23 }
  0xed   :  { %v766_v23 = vmul.f32 %v753_v63, %v1356_v30  ;;  %v768_v27 = vmul.f32 %v753_v63, %v1374_v38  ;;  %v770_v28 = vmul.f32 %v753_v63, %v1378_v41  ;;  %v774_v26 = vmul.f32 %v753_v63, %v1346_v25 }
  0xee   :  { %231 = vperm.xlu0 %1150, %v172_v39   ;;  %216 = vperm.xlu1 %1149, %v167_v40  }
  0xef   :  { %v757_v9 = vpop.permute.xlu0 %756 }
  0xf0   :  { %v761_v10 = vmul.f32 %v757_v9, %v1320_v11  ;;  %v763_v15 = vmul.f32 %v757_v9, %v1328_v16  ;;  %v577_v11 = vmul.f32 %v1362_v33, %v1344_v24  ;;  %v765_v16 = vmul.f32 %v757_v9, %v1322_v12 }
  0xf1   :  { %v767_v30 = vmul.f32 %v757_v9, %v1330_v17  ;;  %v772_v12 = vmul.f32 %v753_v63, %v1382_v44  ;;  %v773_v17 = vmul.f32 %v757_v9, %v1360_v32  ;;  %v775_v35 = vmul.f32 %v757_v9, %v1332_v18 }
  0xf2   :  { %237 = vperm.xlu0 %1150, %v174_v42   ;;  %222 = vperm.xlu1 %1149, %v169_v43  }
  0xf6   :  { %228 = vperm.xlu1 %1149, %v171_v45   ;;  %409 = vperm.xlu0 %1150, %v376_v46  }
  0xfa   :  { %234 = vperm.xlu1 %1149, %v173_v47   ;;  %412 = vperm.xlu0 %1150, %v377_v48  }
  0xfe   :  { %415 = vperm.xlu1 %1149, %v378_v49   ;;  %418 = vperm.xlu0 %1150, %v379_v50  }
 0x102   :  { %433 = vperm.xlu1 %1149, %v384_v51   ;;  %421 = vperm.xlu0 %1150, %v380_v52  }
 0x106   :  { %424 = vperm.xlu0 %1150, %v381_v53   ;;  %604 = vperm.xlu1 %1149, %v569_v54  }
 0x10a   :  { %427 = vperm.xlu0 %1150, %v382_v55   ;;  %610 = vperm.xlu1 %1149, %v571_v56  }
 0x10e   :  { %430 = vperm.xlu0 %1150, %v383_v57   ;;  %613 = vperm.xlu1 %1149, %v572_v58  }
 0x112   :  { %601 = vperm.xlu0 %1150, %v568_v59   ;;  %439 = vperm.xlu1 %1149, %v386_v60  }
 0x116   :  { %607 = vperm.xlu0 %1150, %v570_v61   ;;  %619 = vperm.xlu1 %1149, %v574_v62  }
 0x11a   :  { %436 = vperm.xlu0 %1150, %v385_v0   ;;  %793 = vperm.xlu1 %1149, %v760_v1  }
 0x11e   :  { %616 = vperm.xlu0 %1150, %v573_v2   ;;  %799 = vperm.xlu1 %1149, %v762_v3  }
 0x122   :  { %442 = vperm.xlu0 %1150, %v387_v4   ;;  %445 = vperm.xlu1 %1149, %v388_v7  }
 0x126   :  { %622 = vperm.xlu0 %1150, %v575_v6   ;;  %625 = vperm.xlu1 %1149, %v576_v8  }
 0x12a   :  { %805 = vperm.xlu1 %1149, %v764_v5   ;;  %796 = vperm.xlu0 %1150, %v761_v10  }
 0x12e   :  { %451 = vperm.xlu1 %1149, %v390_v14   ;;  %802 = vperm.xlu0 %1150, %v763_v15  }
 0x132   :  { %631 = vperm.xlu1 %1149, %v578_v20   ;;  %448 = vperm.xlu0 %1150, %v389_v21  }
 0x136   :  { %811 = vperm.xlu1 %1149, %v766_v23   ;;  %628 = vperm.xlu0 %1150, %v577_v11  }
 0x13a   :  { %637 = vperm.xlu1 %1149, %v580_v13   ;;  %808 = vperm.xlu0 %1150, %v765_v16  }
 0x13e   :  { %817 = vperm.xlu1 %1149, %v768_v27   ;;  %454 = vperm.xlu0 %1150, %v1340_v22   ;;  %v769_v22 = vmul.f32 %v757_v9, %v1344_v24  ;;  %v239_v24 = vlaneseq }
 0x140   :  { %v240_v42 = vand.u32 127, %v239_v24 }
 0x142   :  { %643 = vperm.xlu1 %1149, %v1354_v29   ;;  %634 = vperm.xlu0 %1150, %v579_v19   ;;  %v771_v29 = vmul.f32 %v757_v9, %v1358_v31  ;;  %v1462_v31 = vshrl.u32 %v239_v24, 7  ;;  %v245_v44 = vadd.s32 4294967288, %v240_v42 }
 0x144   :  { %v1465_v46 = vsub.s32 %v240_v42, %v1462_v31  ;;  %v1468_v18 = vsub.s32 %v245_v44, %v1462_v31 }
 0x146   :  { %823 = vperm.xlu1 %1149, %v770_v28   ;;  %814 = vperm.xlu0 %1150, %v767_v30  }
 0x14a   :  { %829 = vperm.xlu1 %1149, %v772_v12   ;;  %640 = vperm.xlu0 %1150, %v1368_v36  }
 0x14e   :  { %835 = vperm.xlu1 %1149, %v774_v26   ;;  %820 = vperm.xlu0 %1150, %v769_v22  }
 0x152   :  { %646 = vperm.xlu0 %1150, %v1372_v37  }
 0x156   :  { %826 = vperm.xlu0 %1150, %v771_v29  }
 0x159   :  { %v193_v33 = vpop.permute.xlu1 %192  ;;  %v199_v34 = vpop.permute.xlu0 %198 }
 0x15a   :  { %832 = vperm.xlu0 %1150, %v773_v17   ;;  %v255_v51 = vrot.slane %v199_v34, %v1465_v46  ;;  %v244_v56 = vrot.slane %v193_v33, %v1465_v46 }
 0x15d   :  { %v196_v38 = vpop.permute.xlu1 %195  ;;  %v208_v36 = vpop.permute.xlu0 %207 }
 0x15e   :  { %838 = vperm.xlu0 %1150, %v775_v35   ;;  %v249_v52 = vrot.slane %v196_v38, %v1468_v18  ;;  %v268_v54 = vrot.slane %v208_v36, %v1468_v18 }
 0x160   :  { %v251_v0 = vsel %vm250_vm0, %v249_v52, %v244_v56 }
 0x161   :  { %v202_v25 = vpop.permute.xlu1 %201  ;;  %v214_v39 = vpop.permute.xlu0 %213 }
 0x162   :  { %v259_v47 = vrot.slane %v202_v25, %v1468_v18  ;;  %v277_v58 = vrot.slane %v214_v39, %v1468_v18 }
 0x164   :  { %v260_v57 = vsel %vm250_vm0, %v259_v47, %v255_v51 }
 0x165   :  { %v205_v40 = vpop.permute.xlu1 %204  ;;  %v220_v41 = vpop.permute.xlu0 %219  ;;  %v316_v4 = vsel %vm315_vm1, %v260_v57, %v251_v0 }
 0x166   :  { %v264_v48 = vrot.slane %v205_v40, %v1465_v46  ;;  %v286_v61 = vrot.slane %v220_v41, %v1468_v18 }
 0x168   :  { %v269_v60 = vsel %vm250_vm0, %v268_v54, %v264_v48 }
 0x169   :  { %v211_v37 = vpop.permute.xlu1 %210  ;;  %v226_v43 = vpop.permute.xlu0 %225  ;;  %v318_v8 = vsel %vm317_vm2, %v269_v60, %v316_v4 }
 0x16a   :  { %v273_v53 = vrot.slane %v211_v37, %v1465_v46  ;;  %v295_v2 = vrot.slane %v226_v43, %v1468_v18 }
 0x16c   :  { %v278_v1 = vsel %vm250_vm0, %v277_v58, %v273_v53 }
 0x16d   :  { %v217_v32 = vpop.permute.xlu1 %216  ;;  %v232_v45 = vpop.permute.xlu0 %231  ;;  %v320_v5 = vsel %vm319_vm3, %v278_v1, %v318_v8 }
 0x16e   :  { %v282_v55 = vrot.slane %v217_v32, %v1465_v46  ;;  %v304_v6 = vrot.slane %v232_v45, %v1468_v18 }
 0x170   :  { %v287_v7 = vsel %vm250_vm0, %v286_v61, %v282_v55 }
 0x171   :  { %v223_v49 = vpop.permute.xlu1 %222  ;;  %v238_v50 = vpop.permute.xlu0 %237  ;;  %v322_v20 = vsel %vm321_vm4, %v287_v7, %v320_v5 }
 0x172   :  { %v291_v59 = vrot.slane %v223_v49, %v1465_v46  ;;  %v313_v21 = vrot.slane %v238_v50, %v1468_v18 }
 0x174   :  { %v296_v9 = vsel %vm250_vm0, %v295_v2, %v291_v59 }
 0x175   :  { %v229_v62 = vpop.permute.xlu1 %228  ;;  %v1483_v63 = vpop.permute.xlu0 %409  ;;  %v324_v11 = vsel %vm323_vm5, %v296_v9, %v322_v20 }
 0x176   :  { %v300_v3 = vrot.slane %v229_v62, %v1465_v46  ;;  %v459_v61 = vrot.slane %v1483_v63, %v1465_v46 }
 0x178   :  { %v305_v10 = vsel %vm250_vm0, %v304_v6, %v300_v3 }
 0x179   :  { %v235_v14 = vpop.permute.xlu1 %234  ;;  %v413_v15 = vpop.permute.xlu0 %412  ;;  %v326_v16 = vsel %vm325_vm6, %v305_v10, %v324_v11 }
 0x17a   :  { %v309_v23 = vrot.slane %v235_v14, %v1465_v46  ;;  %v463_v56 = vrot.slane %v413_v15, %v1468_v18 }
 0x17c   :  { %v314_v13 = vsel %vm250_vm0, %v313_v21, %v309_v23  ;;  %v464_v6 = vsel %vm250_vm0, %v463_v56, %v459_v61 }
 0x17d   :  { %v416_v27 = vpop.permute.xlu1 %415  ;;  %v419_v19 = vpop.permute.xlu0 %418  ;;  %v328_v28 = vsel %vm327_vm7, %v314_v13, %v326_v16 }
 0x17e   :  { %v331_v30 = vsel %vm330_vm8, %v328_v28, 0.0  ;;  %v468_v52 = vrot.slane %v416_v27, %v1465_v46  ;;  %v472_v53 = vrot.slane %v419_v19, %v1468_v18 }
 0x17f   :  { %332 = vadd.xlane.f32.xlu1 %v331_v30 }
 0x180   :  { %v473_v62 = vsel %vm250_vm0, %v472_v53, %v468_v52 }
 0x181   :  { %v434_v12 = vpop.permute.xlu1 %433  ;;  %v422_v26 = vpop.permute.xlu0 %421  ;;  %v528_v9 = vsel %vm315_vm1, %v473_v62, %v464_v6 }
 0x182   :  { %v477_v58 = vrot.slane %v422_v26, %v1465_v46  ;;  %v495_v2 = vrot.slane %v434_v12, %v1465_v46 }
 0x185   :  { %v1504_v22 = vpop.permute.xlu1 %604  ;;  %v425_v29 = vpop.permute.xlu0 %424 }
 0x186   :  { %v481_v54 = vrot.slane %v425_v29, %v1468_v18 }
 0x188   :  { %v482_v3 = vsel %vm250_vm0, %v481_v54, %v477_v58 }
 0x189   :  { %v1506_v17 = vpop.permute.xlu1 %610  ;;  %v428_v33 = vpop.permute.xlu0 %427  ;;  %v529_v14 = vsel %vm317_vm2, %v482_v3, %v528_v9 }
 0x18a   :  { %v486_v0 = vrot.slane %v428_v33, %v1465_v46 }
 0x18d   :  { %v1508_v34 = vpop.permute.xlu1 %613  ;;  %v431_v35 = vpop.permute.xlu0 %430 }
 0x18e   :  { %v490_v57 = vrot.slane %v431_v35, %v1468_v18  ;;  %v669_v53 = vrot.slane %v1508_v34, %v1465_v46 }
 0x190   :  { %v491_v8 = vsel %vm250_vm0, %v490_v57, %v486_v0 }
 0x191   :  { %v440_v38 = vpop.permute.xlu1 %439  ;;  %v1510_v36 = vpop.permute.xlu0 %601  ;;  %v530_v20 = vsel %vm319_vm3, %v491_v8, %v529_v14 }
 0x192   :  { %v504_v63 = vrot.slane %v440_v38, %v1465_v46 }
 0x195   :  { %v1512_v25 = vpop.permute.xlu1 %619  ;;  %v1514_v39 = vpop.permute.xlu0 %607 }
 0x196   :  { %v660_v38 = vrot.slane %v1514_v39, %v1465_v46  ;;  %v655_v39 = vrot.slane %v1504_v22, %v1468_v18 }
 0x199   :  { %v1516_v24 = vpop.permute.xlu1 %793  ;;  %v437_v40 = vpop.permute.xlu0 %436 }
 0x19a   :  { %v499_v59 = vrot.slane %v437_v40, %v1468_v18 }
 0x19c   :  { %v500_v5 = vsel %vm250_vm0, %v499_v59, %v495_v2 }
 0x19d   :  { %v1518_v41 = vpop.permute.xlu1 %799  ;;  %v1520_v42 = vpop.permute.xlu0 %616  ;;  %v531_v13 = vsel %vm321_vm4, %v500_v5, %v530_v20 }
 0x19e   :  { %v673_v40 = vrot.slane %v1520_v42, %v1468_v18  ;;  %v678_v42 = vrot.slane %v1512_v25, %v1465_v46 }
 0x1a1   :  { %v446_v37 = vpop.permute.xlu1 %445  ;;  %v443_v43 = vpop.permute.xlu0 %442 }
 0x1a2   :  { %v508_v1 = vrot.slane %v443_v43, %v1468_v18  ;;  %v513_v10 = vrot.slane %v446_v37, %v1465_v46 }
 0x1a4   :  { %v509_v15 = vsel %vm250_vm0, %v508_v1, %v504_v63 }
 0x1a5   :  { %v1522_v44 = vpop.permute.xlu1 %625  ;;  %v1524_v32 = vpop.permute.xlu0 %622  ;;  %v532_v19 = vsel %vm323_vm5, %v509_v15, %v531_v13 }
 0x1a6   :  { %v682_v52 = vrot.slane %v1524_v32, %v1468_v18  ;;  %v687_v32 = vrot.slane %v1522_v44, %v1465_v46 }
 0x1a8   :  { %v683_v58 = vsel %vm250_vm0, %v682_v52, %v678_v42 }
 0x1a9   :  { %v1526_v45 = vpop.permute.xlu1 %805  ;;  %v1528_v47 = vpop.permute.xlu0 %796 }
 0x1ad   :  { %v452_v48 = vpop.permute.xlu1 %451  ;;  %v1530_v49 = vpop.permute.xlu0 %802 }
 0x1ae   :  { %v522_v16 = vrot.slane %v452_v48, %v1465_v46  ;;  %v664_v48 = vrot.slane %v1506_v17, %v1468_v18  ;;  %v856_v63 = vrot.slane %v1530_v49, %v1468_v18 }
 0x1b0   :  { %v665_v56 = vsel %vm250_vm0, %v664_v48, %v660_v38 }
 0x1b1   :  { %v1532_v50 = vpop.permute.xlu1 %631  ;;  %v449_v51 = vpop.permute.xlu0 %448 }
 0x1b2   :  { %v517_v4 = vrot.slane %v449_v51, %v1468_v18  ;;  %v651_v51 = vrot.slane %v1510_v36, %v1465_v46  ;;  %v674_v36 = vsel %vm250_vm0, %v673_v40, %v669_v53  ;;  %v696_v22 = vrot.slane %v1532_v50, %v1465_v46 }
 0x1b4   :  { %v518_v21 = vsel %vm250_vm0, %v517_v4, %v513_v10  ;;  %v1253_v10 = vmov 1  }
 0x1b5   :  { %v629_v55 = vpop.permute.xlu0 %628  ;;  %v1541_v60 = vpop.permute.xlu1 %811  ;;  %v533_v30 = vsel %vm325_vm6, %v518_v21, %v532_v19  ;;  %1151 = vset.pattern.permute.xlu1 %v1253_v10 }
 0x1b6   :  { %v691_v54 = vrot.slane %v629_v55, %v1468_v18  ;;  %v656_v55 = vsel %vm250_vm0, %v655_v39, %v651_v51 }
 0x1b7   :  { %v720_v25 = vsel %vm315_vm1, %v665_v56, %v656_v55 }
 0x1b8   :  { %v692_v59 = vsel %vm250_vm0, %v691_v54, %v687_v32  ;;  %v721_v0 = vsel %vm317_vm2, %v674_v36, %v720_v25  ;;  %v1130_v32 = vld [vmem:[%s1698_s2] ss:$0 sm:$0xff]  ;;  %v1255_v25 = vmov 3  }
 0x1b9   :  { %v1551_v7 = vpop.permute.xlu0 %808  ;;  %v638_v23 = vpop.permute.xlu1 %637  ;;  %v722_v1 = vsel %vm319_vm3, %v683_v58, %v721_v0 }
 0x1ba   :  { %v705_v61 = vrot.slane %v638_v23, %v1465_v46  ;;  %v723_v4 = vsel %vm321_vm4, %v692_v59, %v722_v1  ;;  %v865_v14 = vrot.slane %v1551_v7, %v1468_v18  ;;  %v852_v23 = vrot.slane %v1518_v41, %v1465_v46 }
 0x1bb   :  { %v843_v7 = vrot.slane %v1516_v24, %v1465_v46  ;;  %v870_v41 = vrot.slane %v1541_v60, %v1465_v46 }
 0x1bc   :  { %v857_v19 = vsel %vm250_vm0, %v856_v63, %v852_v23  ;;  %v1136_v63 = vld [vmem:[%s1699_s3 + $0x2] ss:$0 sm:$0xff] }
 0x1bd   :  { %v455_v11 = vpop.permute.xlu0 %454  ;;  %v1571_v33 = vpop.permute.xlu1 %817 }
 0x1be   :  { %v526_v27 = vrot.slane %v455_v11, %v1468_v18  ;;  %v847_v11 = vrot.slane %v1528_v47, %v1468_v18 }
 0x1c0   :  { %v527_v28 = vsel %vm250_vm0, %v526_v27, %v522_v16  ;;  %v861_v16 = vrot.slane %v1526_v45, %v1465_v46  ;;  %v848_v45 = vsel %vm250_vm0, %v847_v11, %v843_v7  ;;  %v994_v7 = vsub.s32 3, %v1462_v31 }
 0x1c1   :  { %v635_v12 = vpop.permute.xlu0 %634  ;;  %v534_v26 = vsel %vm327_vm7, %v527_v28, %v533_v30  ;;  %v644_v37 = vpop.permute.xlu1 %643  ;;  %v879_v30 = vrot.slane %v1571_v33, %v1465_v46 }
 0x1c2   :  { %v536_v29 = vsel %vm330_vm8, %v534_v26, 0.0  ;;  %v700_v17 = vrot.slane %v635_v12, %v1468_v18  ;;  %v714_v50 = vrot.slane %v644_v37, %v1465_v46  ;;  %v866_v28 = vsel %vm250_vm0, %v865_v14, %v861_v16 }
 0x1c3   :  { %537 = vadd.xlane.f32.xlu1 %v536_v29 }
 0x1c4   :  { %v701_v44 = vsel %vm250_vm0, %v700_v17, %v696_v22 }
 0x1c5   :  { %v815_v35 = vpop.permute.xlu0 %814  ;;  %v824_v62 = vpop.permute.xlu1 %823  ;;  %v724_v8 = vsel %vm323_vm5, %v701_v44, %v723_v4  ;;  %v1134_v4 = vld [vmem:[%s1699_s3 + $0x1] ss:$0 sm:$0xff] }
 0x1c6   :  { %v874_v49 = vrot.slane %v815_v35, %v1468_v18  ;;  %v888_v26 = vrot.slane %v824_v62, %v1465_v46  ;;  %v912_v35 = vsel %vm315_vm1, %v857_v19, %v848_v45  ;;  %v961_v19 = vsub.s32 0, %v1462_v31 }
 0x1c7   :  { %v913_v37 = vsel %vm317_vm2, %v866_v28, %v912_v35  ;;  %v1016_v45 = vsub.s32 5, %v1462_v31  ;;  %v1027_v35 = vsub.s32 6, %v1462_v31 }
 0x1c8   :  { %v875_v29 = vsel %vm250_vm0, %v874_v49, %v870_v41 }
 0x1c9   :  { %v641_v43 = vpop.permute.xlu0 %640  ;;  %v830_v15 = vpop.permute.xlu1 %829 }
 0x1ca   :  { %v709_v57 = vrot.slane %v641_v43, %v1468_v18  ;;  %v897_v60 = vrot.slane %v830_v15, %v1465_v46  ;;  %v914_v43 = vsel %vm319_vm3, %v875_v29, %v913_v37  ;;  %v1138_v15 = vld [vmem:[%s1699_s3 + $0x3] ss:$0 sm:$0xff] }
 0x1cc   :  { %v710_v2 = vsel %vm250_vm0, %v709_v57, %v705_v61 }
 0x1cd   :  { %v821_v34 = vpop.permute.xlu0 %820  ;;  %v725_v5 = vsel %vm325_vm6, %v710_v2, %v724_v8  ;;  %v836_v38 = vpop.permute.xlu1 %835  ;;  %v1131_v2 = vld [vmem:[%s1699_s3] ss:$0 sm:$0xff]  ;;  %s1256_s3 = smov [#allocation7]  }
 0x1ce   :  { %v883_v27 = vrot.slane %v821_v34, %v1468_v18  ;;  %v906_v52 = vrot.slane %v836_v38, %v1465_v46  ;;  %v1132_v8 = vld [vmem:[%s1700_s4] ss:$0 sm:$0xff]  ;;  %v1038_v38 = vsub.s32 7, %v1462_v31  ;;  %s1116_s4 = sshll.u32 %s1256_s3, 4  ;;  %s1117_s4 = int_to_ptr.vmem [resolvable:$true] %s1116_s4 }
 0x1cf   :  { %s1220_s30 = scalar_lea.vmem %s1117_s4, 4096  ;;  %p1225_p3 = scmp.lt.s32.totalorder %s1117_s4, %s1117_s4 }
 0x1d0   :  { %v884_v40 = vsel %vm250_vm0, %v883_v27, %v879_v30  ;;  %v1005_v30 = vsub.s32 4, %v1462_v31  ;;  %p1221_p2 = scmp.ne.s32.totalorder %s1117_s4, %s1220_s30  ;;  %p1226_p4 = scmp.lt.s32.totalorder %s1220_s30, %s1220_s30 }
 0x1d1   :  { %v647_v3 = vpop.permute.xlu0 %646  ;;  %v915_v53 = vsel %vm321_vm4, %v884_v40, %v914_v43  ;;  %v983_v40 = vsub.s32 2, %v1462_v31  ;;  %v943_v43 = vld [vmem:[#allocation2] sm:$0xff] }
 0x1d2   :  { %v718_v6 = vrot.slane %v647_v3, %v1468_v18  ;;  %p1227_p5 = por %p1226_p4, %p1225_p3 }
 0x1d4   :  { %v719_v9 = vsel %vm250_vm0, %v718_v6, %v714_v50  ;;  %p1228_p6 = pnand %p1227_p5, %p1221_p2 }
 0x1d5   :  { %v827_v20 = vpop.permute.xlu0 %826  ;;  %v726_v21 = vsel %vm327_vm7, %v719_v9, %v725_v5 }
 0x1d6   :  { %v728_v13 = vsel %vm330_vm8, %v726_v21, 0.0  ;;  %v892_v47 = vrot.slane %v827_v20, %v1468_v18 }
 0x1d7   :  { %729 = vadd.xlane.f32.xlu0 %v728_v13 }
 0x1d8   :  { %v893_v33 = vsel %vm250_vm0, %v892_v47, %v888_v26  ;;  %v972_v26 = vsub.s32 1, %v1462_v31 }
 0x1d9   :  { %v833_v12 = vpop.permute.xlu0 %832  ;;  %v916_v39 = vsel %vm323_vm5, %v893_v33, %v915_v53 }
 0x1da   :  { %v901_v24 = vrot.slane %v833_v12, %v1468_v18 }
 0x1dc   :  { %v902_v48 = vsel %vm250_vm0, %v901_v24, %v897_v60 }
 0x1dd   :  { %v839_v51 = vpop.permute.xlu0 %838  ;;  %v917_v56 = vsel %vm325_vm6, %v902_v48, %v916_v39 }
 0x1de   :  { %v910_v54 = vrot.slane %v839_v51, %v1468_v18  ;;  %v1254_v18 = vmov 2  }
 0x1e0   :  { %v911_v42 = vsel %vm250_vm0, %v910_v54, %v906_v52  ;;  %v1159_v52 = vld [vmem:[#allocation2 + $0x70] sm:$0xff]  ;;  %v1160_v54 = vld [vmem:[#allocation2 + $0x78] sm:$0xff] }
 0x1e1   :  { %v918_v17 = vsel %vm327_vm7, %v911_v42, %v917_v56  ;;  %v1161_v42 = vld [vmem:[#allocation2 + $0x8] sm:$0xff] }
 0x1e2   :  { %v920_v36 = vsel %vm330_vm8, %v918_v17, 0.0  ;;  %v952_v17 = vld [vmem:[#allocation2 + $0x90] sm:$0xff] }
 0x1e3   :  { %921 = vadd.xlane.f32.xlu0 %v920_v36  ;;  %v944_v36 = vld [vmem:[#allocation2 + $0x10] sm:$0xff] }
 0x20c   :  { %v333_v46 = vpop.xlane.xlu1 %332 }
 0x20d   :  { %v341_v57 = vadd.f32 %v1130_v32, %v333_v46 }
 0x20f   :  { %v342_v34 = vmax.f32 %v341_v57, 0.0 }
 0x211   :  { %346 = vperm.xlu0 %1150, %v342_v34   ;;  %v1162_v34 = vld [vmem:[#allocation2 + $0x98] sm:$0xff] }
 0x215   :  { %1152 = vset.pattern.permute.xlu0 %v1254_v18 }
 0x250   :  { %v538_v55 = vpop.xlane.xlu1 %537 }
 0x251   :  { %v539_v58 = vadd.f32 %v1130_v32, %v538_v55 }
 0x253   :  { %v540_v22 = vmax.f32 %v539_v58, 0.0  ;;  %v1163_v58 = vld [vmem:[#allocation2 + $0x18] sm:$0xff] }
 0x255   :  { %544 = vperm.xlu1 %1151, %v540_v22  }
 0x259   :  { %1153 = vset.pattern.permute.xlu1 %v1255_v25 }
 0x264   :  { %v730_v59 = vpop.xlane.xlu0 %729 }
 0x265   :  { %v731_v61 = vadd.f32 %v1130_v32, %v730_v59  ;;  %v945_v59 = vld [vmem:[#allocation2 + $0x20] sm:$0xff] }
 0x267   :  { %v732_v62 = vmax.f32 %v731_v61, 0.0 }
 0x269   :  { %736 = vperm.xlu0 %1152, %v732_v62  }
 0x26d   :  { %1154 = vset.pattern.permute.xlu0 %v1255_v25  ;;  %v954_v25 = vld [vmem:[#allocation2 + $0xb0] sm:$0xff] }
 0x270   :  { %v922_v0 = vpop.xlane.xlu0 %921 }
 0x271   :  { %v923_v44 = vadd.f32 %v1130_v32, %v922_v0 }
 0x273   :  { %v924_v1 = vmax.f32 %v923_v44, 0.0  ;;  %v1164_v44 = vld [vmem:[#allocation2 + $0xb8] sm:$0xff] }
 0x275   :  { %928 = vperm.xlu1 %1153, %v924_v1  }
 0x290   :  { %v347_v3 = vpop.permute.xlu0 %346 }
 0x291   :  { %v353_v6 = vmul.f32 %v1131_v2, %v347_v3  ;;  %v1165_v3 = vld [vmem:[#allocation2 + $0x28] sm:$0xff] }
 0x293   :  { %v360_v10 = vadd.f32 %v1132_v8, %v353_v6  ;;  %v946_v6 = vld [vmem:[#allocation2 + $0x30] sm:$0xff] }
 0x2d4   :  { %v545_v50 = vpop.permute.xlu1 %544 }
 0x2d5   :  { %v551_v5 = vmul.f32 %v1134_v4, %v545_v50  ;;  %v956_v50 = vld [vmem:[#allocation2 + $0xd0] sm:$0xff] }
 0x2d7   :  { %v552_v20 = vadd.f32 %v551_v5, %v360_v10  ;;  %v1166_v5 = vld [vmem:[#allocation2 + $0xd8] sm:$0xff] }
 0x2e8   :  { %v737_v9 = vpop.permute.xlu0 %736 }
 0x2e9   :  { %v743_v14 = vmul.f32 %v1136_v63, %v737_v9 }
 0x2eb   :  { %v744_v23 = vadd.f32 %v743_v14, %v552_v20 }
 0x2f4   :  { %v929_v21 = vpop.permute.xlu1 %928 }
 0x2f5   :  { %v935_v11 = vmul.f32 %v1138_v15, %v929_v21  ;;  %v1167_v15 = vld [vmem:[#allocation2 + $0x38] sm:$0xff]  ;;  %v958_v21 = vld [vmem:[#allocation2 + $0xf0] sm:$0xff] }
 0x2f7   :  { %v936_v49 = vadd.f32 %v935_v11, %v744_v23  ;;  %v947_v23 = vld [vmem:[#allocation2 + $0x40] sm:$0xff] }
 0x2f9   :  { %v1139_v13 = vmul.f32 -1.442695, %v936_v49 }
 0x2fb   :  { %1155 = vpow2.f32 %v1139_v13 }
 0x305   :  { %v1156_v16 = vpop.eup %1155 }
 0x306   :  { %v940_v27 = vadd.f32 1.0, %v1156_v16  ;;  %v1168_v16 = vld [vmem:[#allocation2 + $0xf8] sm:$0xff] }
 0x308   :  { %1157 = vrcp.f32 %v940_v27 }
 0x312   :  { %v1158_v41 = vpop.eup %1157 }
 0x313   :  { %v995_v47 = vrot.slane %v1158_v41, %v994_v7  ;;  %v962_v28 = vrot.slane %v1158_v41, %v961_v19  ;;  %v1006_v12 = vrot.slane %v1158_v41, %v1005_v30  ;;  %v1017_v29 = vrot.slane %v1158_v41, %v1016_v45  ;;  %v1169_v19 = vld [vmem:[#allocation2 + $0x48] sm:$0xff] }
 0x314   :  { %v973_v24 = vrot.slane %v1158_v41, %v972_v26  ;;  %v1028_v60 = vrot.slane %v1158_v41, %v1027_v35  ;;  %v1039_v37 = vrot.slane %v1158_v41, %v1038_v38  ;;  %v984_v33 = vrot.slane %v1158_v41, %v983_v40  ;;  %v949_v26 = vld [vmem:[#allocation2 + $0x60] sm:$0xff]  ;;  %v1171_v35 = vld [vmem:[#allocation2 + $0x68] sm:$0xff] }
 0x315   :  { %1001 = vbcast.lane.b32.xlu0 %v995_v47, 264  ;;  %964 = vbcast.lane.b32.xlu1 %v962_v28, 256  ;;  %v951_v38 = vld [vmem:[#allocation2 + $0x80] sm:$0xff] }
 0x319   :  { %1012 = vbcast.lane.b32.xlu0 %v1006_v12, 264  ;;  %968 = vbcast.lane.b32.xlu1 %v962_v28, 264 }
 0x31d   :  { %1023 = vbcast.lane.b32.xlu0 %v1017_v29, 264  ;;  %975 = vbcast.lane.b32.xlu1 %v973_v24, 256 }
 0x321   :  { %1034 = vbcast.lane.b32.xlu0 %v1028_v60, 264  ;;  %979 = vbcast.lane.b32.xlu1 %v973_v24, 264 }
 0x325   :  { %1045 = vbcast.lane.b32.xlu0 %v1039_v37, 264  ;;  %986 = vbcast.lane.b32.xlu1 %v984_v33, 256 }
 0x329   :  { %990 = vbcast.lane.b32.xlu1 %v984_v33, 264  ;;  %v1172_v33 = vld [vmem:[#allocation2 + $0x88] sm:$0xff] }
 0x32d   :  { %997 = vbcast.lane.b32.xlu1 %v995_v47, 256  ;;  %v948_v47 = vld [vmem:[#allocation2 + $0x50] sm:$0xff] }
 0x331   :  { %1008 = vbcast.lane.b32.xlu1 %v1006_v12, 256  ;;  %v1170_v12 = vld [vmem:[#allocation2 + $0x58] sm:$0xff] }
 0x335   :  { %1019 = vbcast.lane.b32.xlu1 %v1017_v29, 256 }
 0x339   :  { %1030 = vbcast.lane.b32.xlu1 %v1028_v60, 256 }
 0x33d   :  { %1041 = vbcast.lane.b32.xlu1 %v1039_v37, 256 }
 0x387   :  { %v1002_v48 = vpop.permute.xlu0 %1001  ;;  %v965_v51 = vpop.permute.xlu1 %964 }
 0x388   :  { %v1061_v53 = vmul.f32 %v1159_v52, %v1002_v48  ;;  %v1062_v39 = vmul.f32 %v1160_v54, %v1002_v48  ;;  %v1047_v31 = vmul.f32 %v965_v51, %v943_v43  ;;  %v1048_v56 = vmul.f32 %v1161_v42, %v965_v51  ;;  %v953_v48 = vld [vmem:[#allocation2 + $0xa0] sm:$0xff] }
 0x38a   :  { %1093 = vst [vmem:[#allocation7 + $0x70] sm:$0xff] %v1061_v53  ;;  %1094 = vst [vmem:[#allocation7 + $0x78] sm:$0xff] %v1062_v39  ;;  %v1173_v53 = vld [vmem:[#allocation2 + $0xa8] sm:$0xff]  ;;  %v955_v39 = vld [vmem:[#allocation2 + $0xc0] sm:$0xff] }
 0x38b   :  { %1079 = vst [vmem:[#allocation7] sm:$0xff] %v1047_v31  ;;  %1080 = vst [vmem:[#allocation7 + $0x8] sm:$0xff] %v1048_v56  ;;  %v1013_v32 = vpop.permute.xlu0 %1012  ;;  %v969_v46 = vpop.permute.xlu1 %968  ;;  %v1174_v56 = vld [vmem:[#allocation2 + $0xc8] sm:$0xff] }
 0x38c   :  { %v1065_v57 = vmul.f32 %v1013_v32, %v952_v17  ;;  %v1066_v18 = vmul.f32 %v1162_v34, %v1013_v32  ;;  %v1049_v55 = vmul.f32 %v969_v46, %v944_v36  ;;  %v1050_v22 = vmul.f32 %v1163_v58, %v969_v46  ;;  %v957_v36 = vld [vmem:[#allocation2 + $0xe0] sm:$0xff] }
 0x38e   :  { %1097 = vst [vmem:[#allocation7 + $0x90] sm:$0xff] %v1065_v57  ;;  %1098 = vst [vmem:[#allocation7 + $0x98] sm:$0xff] %v1066_v18  ;;  %v1175_v57 = vld [vmem:[#allocation2 + $0xe8] sm:$0xff] }
 0x38f   :  { %1081 = vst [vmem:[#allocation7 + $0x10] sm:$0xff] %v1049_v55  ;;  %1082 = vst [vmem:[#allocation7 + $0x18] sm:$0xff] %v1050_v22  ;;  %v1024_v61 = vpop.permute.xlu0 %1023  ;;  %v976_v62 = vpop.permute.xlu1 %975 }
 0x390   :  { %v1069_v0 = vmul.f32 %v1024_v61, %v954_v25  ;;  %v1070_v1 = vmul.f32 %v1164_v44, %v1024_v61  ;;  %v1051_v2 = vmul.f32 %v976_v62, %v945_v59  ;;  %v1052_v4 = vmul.f32 %v1165_v3, %v976_v62 }
 0x392   :  { %1101 = vst [vmem:[#allocation7 + $0xb0] sm:$0xff] %v1069_v0  ;;  %1102 = vst [vmem:[#allocation7 + $0xb8] sm:$0xff] %v1070_v1 }
 0x393   :  { %1083 = vst [vmem:[#allocation7 + $0x20] sm:$0xff] %v1051_v2  ;;  %1084 = vst [vmem:[#allocation7 + $0x28] sm:$0xff] %v1052_v4  ;;  %v1035_v8 = vpop.permute.xlu0 %1034  ;;  %v980_v63 = vpop.permute.xlu1 %979 }
 0x394   :  { %v1073_v9 = vmul.f32 %v1035_v8, %v956_v50  ;;  %v1074_v10 = vmul.f32 %v1166_v5, %v1035_v8  ;;  %v1053_v14 = vmul.f32 %v980_v63, %v946_v6  ;;  %v1054_v20 = vmul.f32 %v1167_v15, %v980_v63 }
 0x396   :  { %1105 = vst [vmem:[#allocation7 + $0xd0] sm:$0xff] %v1073_v9  ;;  %1106 = vst [vmem:[#allocation7 + $0xd8] sm:$0xff] %v1074_v10 }
 0x397   :  { %1085 = vst [vmem:[#allocation7 + $0x30] sm:$0xff] %v1053_v14  ;;  %1086 = vst [vmem:[#allocation7 + $0x38] sm:$0xff] %v1054_v20  ;;  %v1046_v11 = vpop.permute.xlu0 %1045  ;;  %v987_v49 = vpop.permute.xlu1 %986 }
 0x398   :  { %v1077_v13 = vmul.f32 %v1046_v11, %v958_v21  ;;  %v1078_v27 = vmul.f32 %v1168_v16, %v1046_v11  ;;  %v1055_v7 = vmul.f32 %v987_v49, %v947_v23  ;;  %v1056_v41 = vmul.f32 %v1169_v19, %v987_v49 }
 0x39a   :  { %1109 = vst [vmem:[#allocation7 + $0xf0] sm:$0xff] %v1077_v13  ;;  %1110 = vst [vmem:[#allocation7 + $0xf8] sm:$0xff] %v1078_v27 }
 0x39b   :  { %1087 = vst [vmem:[#allocation7 + $0x40] sm:$0xff] %v1055_v7  ;;  %1088 = vst [vmem:[#allocation7 + $0x48] sm:$0xff] %v1056_v41  ;;  %v991_v28 = vpop.permute.xlu1 %990 }
 0x39c   :  { %v1057_v30 = vmul.f32 %v991_v28, %v948_v47  ;;  %v1058_v45 = vmul.f32 %v1170_v12, %v991_v28 }
 0x39e   :  { %1089 = vst [vmem:[#allocation7 + $0x50] sm:$0xff] %v1057_v30  ;;  %1090 = vst [vmem:[#allocation7 + $0x58] sm:$0xff] %v1058_v45 }
 0x39f   :  { %v998_v29 = vpop.permute.xlu1 %997 }
 0x3a0   :  { %v1059_v24 = vmul.f32 %v998_v29, %v949_v26  ;;  %v1060_v60 = vmul.f32 %v1171_v35, %v998_v29 }
 0x3a2   :  { %1091 = vst [vmem:[#allocation7 + $0x60] sm:$0xff] %v1059_v24  ;;  %1092 = vst [vmem:[#allocation7 + $0x68] sm:$0xff] %v1060_v60 }
 0x3a3   :  { %v1009_v40 = vpop.permute.xlu1 %1008 }
 0x3a4   :  { %v1063_v37 = vmul.f32 %v1009_v40, %v951_v38  ;;  %v1064_v43 = vmul.f32 %v1172_v33, %v1009_v40 }
 0x3a6   :  { %1095 = vst [vmem:[#allocation7 + $0x80] sm:$0xff] %v1063_v37  ;;  %1096 = vst [vmem:[#allocation7 + $0x88] sm:$0xff] %v1064_v43 }
 0x3a7   :  { %v1020_v51 = vpop.permute.xlu1 %1019 }
 0x3a8   :  { %v1067_v52 = vmul.f32 %v1020_v51, %v953_v48  ;;  %v1068_v54 = vmul.f32 %v1173_v53, %v1020_v51 }
 0x3aa   :  { %1099 = vst [vmem:[#allocation7 + $0xa0] sm:$0xff] %v1067_v52  ;;  %1100 = vst [vmem:[#allocation7 + $0xa8] sm:$0xff] %v1068_v54 }
 0x3ab   :  { %v1031_v31 = vpop.permute.xlu1 %1030 }
 0x3ac   :  { %v1071_v42 = vmul.f32 %v1031_v31, %v955_v39  ;;  %v1072_v17 = vmul.f32 %v1174_v56, %v1031_v31 }
 0x3ae   :  { %1103 = vst [vmem:[#allocation7 + $0xc0] sm:$0xff] %v1071_v42  ;;  %1104 = vst [vmem:[#allocation7 + $0xc8] sm:$0xff] %v1072_v17 }
 0x3af   :  { %v1042_v32 = vpop.permute.xlu1 %1041 }
 0x3b0   :  { %v1075_v46 = vmul.f32 %v1042_v32, %v957_v36  ;;  %v1076_v34 = vmul.f32 %v1175_v57, %v1042_v32 }
 0x3b2   :  { %1107 = vst [vmem:[#allocation7 + $0xe0] sm:$0xff] %v1075_v46  ;;  %1108 = vst [vmem:[#allocation7 + $0xe8] sm:$0xff] %v1076_v34 }
 0x3b3   :  { %1231 = shalt.err (!%p1228_p6)
}
 0x3b4   :  { %s1232_s8 = scalar_lea.hbm %s1701_s5, 4096 }
 0x3b5   :  { %p1233_p7 = scmp.ne.s32.totalorder %s1701_s5, %s1232_s8  ;;  %p1236_p8 = scmp.lt.u32.totalorder %s1232_s8, %s1701_s5 }
 0x3b7   :  { %p1238_p9 = pnand %p1236_p8, %p1233_p7 }
 0x3b9   :  { %1241 = shalt.err (!%p1238_p9)
}
 0x3ba   :  { %1122 = dma.vmem_to_hbm [thread:$0]  %s1117_s4, 4096, %s1701_s5, [#allocation4], %s1249_s28, %s1249_s28, %s1250_s29  }
 0x3bb   :  { %1246 = dma.done.wait [#allocation4], 4096  }
 0x3bc   :  { %1247 = vsyncadd [#allocation4], 4294963200 }
 0x3bd   :  { %1126 = vsyncpa [#allocation3], 1 }
 0x3be   :  { %1127 = vsyncpa [#allocation6], 1 }
 0x3bf   :  { %1128 = vsyncpa [#allocation4], 1 }

</bundles_post_ra>
